<compile_context>
chip_gen: v7x
topology: tpu7x:2x2x1
jax: 0.10.0
libtpu: 0.0.40
codegen_flags: <defaults>
</compile_context>

<pallas_src>
import math

import jax
import jax.numpy as jnp
from jax.experimental import pallas as pl
from jax.experimental.pallas import tpu as pltpu

HIDDEN = 128


def _round_up(x, m):
    return ((x + m - 1) // m) * m


def critic_kernel(x_ref, w1_ref, b1_ref, w2_ref, b2_ref, w3_ref, b3_ref, o_ref):
    x = x_ref[...]                                                     # [TB, n_states]
    h1 = jnp.tanh(
        jnp.dot(x, w1_ref[...], preferred_element_type=jnp.float32) + b1_ref[...]
    )                                                                  # [TB, 128]
    h2 = jnp.tanh(
        jnp.dot(h1, w2_ref[...], preferred_element_type=jnp.float32) + b2_ref[...]
    )                                                                  # [TB, 128]
    # Final 128 -> 1 layer on the VPU/XLU: elementwise mul + lane reduction
    # against the [1, 128] weight row (no MXU pass for a single column).
    v = jnp.sum(h2 * w3_ref[...], axis=-1, keepdims=True)              # [TB, 1]
    o_ref[...] = v + b3_ref[0, 0]


def critic_forward(x, params, tile_b=256):
    w1, b1, w2, b2, w3_row, b3 = params
    B, n_states = x.shape
    H = w1.shape[1]

    # Adaptive batch tile: big enough to amortize per-step overhead, never
    # larger than the sublane-rounded batch itself.
    tile_b = min(tile_b, _round_up(B, 8))
    Bp = _round_up(B, tile_b)
    if Bp != B:
        x = jnp.pad(x, ((0, Bp - B), (0, 0)))
    num_tiles = Bp // tile_b

    flops = 2 * Bp * (n_states * H + H * H + H)
    transcendentals = 2 * Bp * H
    bytes_accessed = (
        x.size * 4 + Bp * 4
        + (w1.size + b1.size + w2.size + b2.size + w3_row.size + b3.size) * 4
    )

    out = pl.pallas_call(
        critic_kernel,
        out_shape=jax.ShapeDtypeStruct((Bp, 1), jnp.float32),
        grid=(num_tiles,),
        in_specs=[
            pl.BlockSpec((tile_b, n_states), lambda i: (i, 0)),    # x: tiled on batch
            pl.BlockSpec((n_states, H), lambda i: (0, 0)),         # W1, VMEM-resident
            pl.BlockSpec((1, H), lambda i: (0, 0)),                # b1
            pl.BlockSpec((H, H), lambda i: (0, 0)),                # W2
            pl.BlockSpec((1, H), lambda i: (0, 0)),                # b2
            pl.BlockSpec((1, H), lambda i: (0, 0)),                # w3 as lane row
            pl.BlockSpec(memory_space=pltpu.MemorySpace.SMEM),     # b3 scalar
        ],
        out_specs=pl.BlockSpec((tile_b, 1), lambda i: (i, 0)),
        compiler_params=pltpu.CompilerParams(
            dimension_semantics=("parallel",),
        ),
        cost_estimate=pl.CostEstimate(
            flops=flops,
            transcendentals=transcendentals,
            bytes_accessed=bytes_accessed,
        ),
    )(x, w1, b1, w2, b2, w3_row, b3)
    return out[:B]


def init_params(key, n_states, hidden=HIDDEN):
    """Deterministic init mimicking PyTorch nn.Linear default U(-1/sqrt(fan_in), +)."""
    keys = jax.random.split(key, 6)

    def uniform(k, shape, fan_in):
        bound = 1.0 / math.sqrt(fan_in)
        return jax.random.uniform(k, shape, jnp.float32, -bound, bound)

    w1 = uniform(keys[0], (n_states, hidden), n_states)   # stored [in, out]
    b1 = uniform(keys[1], (1, hidden), n_states)
    w2 = uniform(keys[2], (hidden, hidden), hidden)
    b2 = uniform(keys[3], (1, hidden), hidden)
    w3_row = uniform(keys[4], (1, hidden), hidden)         # final layer as [1, 128] row
    b3 = uniform(keys[5], (1, 1), hidden)
    return (w1, b1, w2, b2, w3_row, b3)


def critic_ref(x, params):
    """Pure-JAX reference for correctness checking."""
    w1, b1, w2, b2, w3_row, b3 = params
    h1 = jnp.tanh(x @ w1 + b1)
    h2 = jnp.tanh(h1 @ w2 + b2)
    return h2 @ w3_row.T + b3


if __name__ == "__main__":
    n_states = 4   # CartPole observation dim

    key = jax.random.PRNGKey(0)
    k_params, k_x1, k_x2 = jax.random.split(key, 3)
    params = init_params(k_params, n_states)

    # Batched case: 512 rows -> grid of 2 batch tiles, weights resident in VMEM.
    x_big = jax.random.normal(k_x1, (512, n_states), jnp.float32)
    out_big = jax.block_until_ready(critic_forward(x_big, params, tile_b=256))
    ref_big = critic_ref(x_big, params)
    assert out_big.shape == (512, 1), out_big.shape
    assert jnp.allclose(out_big, ref_big, atol=1e-5, rtol=1e-5)

    # Tiny RL-style batch: exercises the adaptive tile / padding path.
    x_small = jax.random.normal(k_x2, (8, n_states), jnp.float32)
    out_small = jax.block_until_ready(critic_forward(x_small, params))
    ref_small = critic_ref(x_small, params)
    assert out_small.shape == (8, 1), out_small.shape
    assert jnp.allclose(out_small, ref_small, atol=1e-5, rtol=1e-5)

    print("KERNEL_OK")
</pallas_src>

<mosaic_0001>
module attributes {stable_mosaic.version = 11 : i64} {
  func.func @critic_kernel(%arg0: i32, %arg1: memref<256x4xf32, #tpu.memory_space<vmem>>, %arg2: memref<4x128xf32, #tpu.memory_space<vmem>>, %arg3: memref<1x128xf32, #tpu.memory_space<vmem>>, %arg4: memref<128x128xf32, #tpu.memory_space<vmem>>, %arg5: memref<1x128xf32, #tpu.memory_space<vmem>>, %arg6: memref<1x128xf32, #tpu.memory_space<vmem>>, %arg7: memref<1x1xf32, #tpu.memory_space<smem>>, %arg8: memref<256x1xf32, #tpu.memory_space<vmem>>) attributes {dimension_semantics = [#tpu.dimension_semantics<parallel>], iteration_bounds = array<i64: 2>, scalar_prefetch = 0 : i64, scratch_operands = 0 : i64, tpu.core_type = #tpu.core_type<tc>, window_params = [{transform_indices = @transform_0, window_bounds = array<i64: 256, 4>}, {pipeline_mode = #tpu.pipeline_mode<synchronous>, transform_indices = @transform_1, window_bounds = array<i64: 4, 128>}, {pipeline_mode = #tpu.pipeline_mode<synchronous>, transform_indices = @transform_2, window_bounds = array<i64: 1, 128>}, {pipeline_mode = #tpu.pipeline_mode<synchronous>, transform_indices = @transform_3, window_bounds = array<i64: 128, 128>}, {pipeline_mode = #tpu.pipeline_mode<synchronous>, transform_indices = @transform_4, window_bounds = array<i64: 1, 128>}, {pipeline_mode = #tpu.pipeline_mode<synchronous>, transform_indices = @transform_5, window_bounds = array<i64: 1, 128>}, {transform_indices = @transform_6, window_bounds = array<i64: 1, 1>}, {transform_indices = @transform_7, window_bounds = array<i64: 256, 1>}]} {
    %c0 = arith.constant 0 : index
    %c0_0 = arith.constant 0 : index
    %0 = vector.load %arg1[%c0, %c0_0] : memref<256x4xf32, #tpu.memory_space<vmem>>, vector<256x4xf32>
    %c0_1 = arith.constant 0 : index
    %c0_2 = arith.constant 0 : index
    %1 = vector.load %arg2[%c0_1, %c0_2] : memref<4x128xf32, #tpu.memory_space<vmem>>, vector<4x128xf32>
    %cst = arith.constant dense<0.000000e+00> : vector<256x128xf32>
    %2 = tpu.matmul %0, %1, %cst {dimension_numbers = #tpu.dot_dimension_numbers<[1], [0], [0], [1], [0, 0, 1, 1], [], []>} : vector<256x4xf32>, vector<4x128xf32>, vector<256x128xf32> -> vector<256x128xf32>
    %c0_3 = arith.constant 0 : index
    %c0_4 = arith.constant 0 : index
    %3 = vector.load %arg3[%c0_3, %c0_4] : memref<1x128xf32, #tpu.memory_space<vmem>>, vector<1x128xf32>
    %4 = vector.broadcast %3 : vector<1x128xf32> to vector<256x128xf32>
    %5 = arith.addf %2, %4 : vector<256x128xf32>
    %6 = math.tanh %5 : vector<256x128xf32>
    %c0_5 = arith.constant 0 : index
    %c0_6 = arith.constant 0 : index
    %7 = vector.load %arg4[%c0_5, %c0_6] : memref<128x128xf32, #tpu.memory_space<vmem>>, vector<128x128xf32>
    %cst_7 = arith.constant dense<0.000000e+00> : vector<256x128xf32>
    %8 = tpu.matmul %6, %7, %cst_7 {dimension_numbers = #tpu.dot_dimension_numbers<[1], [0], [0], [1], [0, 0, 1, 1], [], []>} : vector<256x128xf32>, vector<128x128xf32>, vector<256x128xf32> -> vector<256x128xf32>
    %c0_8 = arith.constant 0 : index
    %c0_9 = arith.constant 0 : index
    %9 = vector.load %arg5[%c0_8, %c0_9] : memref<1x128xf32, #tpu.memory_space<vmem>>, vector<1x128xf32>
    %10 = vector.broadcast %9 : vector<1x128xf32> to vector<256x128xf32>
    %11 = arith.addf %8, %10 : vector<256x128xf32>
    %12 = math.tanh %11 : vector<256x128xf32>
    %c0_10 = arith.constant 0 : index
    %c0_11 = arith.constant 0 : index
    %13 = vector.load %arg6[%c0_10, %c0_11] : memref<1x128xf32, #tpu.memory_space<vmem>>, vector<1x128xf32>
    %14 = vector.broadcast %13 : vector<1x128xf32> to vector<256x128xf32>
    %15 = arith.mulf %12, %14 : vector<256x128xf32>
    %cst_12 = arith.constant dense<0.000000e+00> : vector<256xf32>
    %16 = vector.multi_reduction <add>, %15, %cst_12 [1] : vector<256x128xf32> to vector<256xf32>
    %17 = vector.shape_cast %16 : vector<256xf32> to vector<256x1xf32>
    %c0_13 = arith.constant 0 : index
    %c0_14 = arith.constant 0 : index
    %18 = memref.load %arg7[%c0_13, %c0_14] : memref<1x1xf32, #tpu.memory_space<smem>>
    %19 = vector.broadcast %18 : f32 to vector<256x1xf32>
    %20 = arith.addf %17, %19 : vector<256x1xf32>
    %c0_15 = arith.constant 0 : index
    %c0_16 = arith.constant 0 : index
    %21 = vector.load %arg8[%c0_15, %c0_16] : memref<256x1xf32, #tpu.memory_space<vmem>>, vector<256x1xf32>
    tpu.vector_store %arg8[%c0_15, %c0_16], %20 {strides = array<i32>} : memref<256x1xf32, #tpu.memory_space<vmem>>, vector<256x1xf32>,
    return
  }
  func.func @transform_0(%arg0: i32) -> (i32, i32) {
    %c0_i32 = arith.constant 0 : i32
    %c0_i32_0 = arith.constant 0 : i32
    return %arg0, %c0_i32 : i32, i32
  }
  func.func @transform_1(%arg0: i32) -> (i32, i32) {
    %c0_i32 = arith.constant 0 : i32
    %c0_i32_0 = arith.constant 0 : i32
    %c0_i32_1 = arith.constant 0 : i32
    return %c0_i32, %c0_i32_0 : i32, i32
  }
  func.func @transform_2(%arg0: i32) -> (i32, i32) {
    %c0_i32 = arith.constant 0 : i32
    %c0_i32_0 = arith.constant 0 : i32
    %c0_i32_1 = arith.constant 0 : i32
    return %c0_i32, %c0_i32_0 : i32, i32
  }
  func.func @transform_3(%arg0: i32) -> (i32, i32) {
    %c0_i32 = arith.constant 0 : i32
    %c0_i32_0 = arith.constant 0 : i32
    %c0_i32_1 = arith.constant 0 : i32
    return %c0_i32, %c0_i32_0 : i32, i32
  }
  func.func @transform_4(%arg0: i32) -> (i32, i32) {
    %c0_i32 = arith.constant 0 : i32
    %c0_i32_0 = arith.constant 0 : i32
    %c0_i32_1 = arith.constant 0 : i32
    return %c0_i32, %c0_i32_0 : i32, i32
  }
  func.func @transform_5(%arg0: i32) -> (i32, i32) {
    %c0_i32 = arith.constant 0 : i32
    %c0_i32_0 = arith.constant 0 : i32
    %c0_i32_1 = arith.constant 0 : i32
    return %c0_i32, %c0_i32_0 : i32, i32
  }
  func.func @transform_6(%arg0: i32) -> (i32, i32) {
    %c0_i32 = arith.constant 0 : i32
    %c0_i32_0 = arith.constant 0 : i32
    %c0_i32_1 = arith.constant 0 : i32
    return %c0_i32, %c0_i32_0 : i32, i32
  }
  func.func @transform_7(%arg0: i32) -> (i32, i32) {
    %c0_i32 = arith.constant 0 : i32
    %c0_i32_0 = arith.constant 0 : i32
    return %arg0, %c0_i32 : i32, i32
  }
}

</mosaic_0001>

<bundles_post_ra>
// kernel: tpu_custom_call.1
= control target key start
LH: loop header
LB: loop body
LE: loop exit
PB: predicated region body
PF: predicated region fallthrough
CT: control target
= control target key end

     0   :  { %s1680_s26 = smov 0   ;;  %s2032_s0 = inlined_call_operand.vmem [shape: f32[512,4], index: 0, kind: input, shape index: {}]   ;;  %s2033_s1 = inlined_call_operand.vmem [shape: f32[4,128], index: 1, kind: input, shape index: {}]   ;;  %s2034_s2 = inlined_call_operand.vmem [shape: f32[1,128], index: 2, kind: input, shape index: {}]   ;;  %s2035_s3 = inlined_call_operand.vmem [shape: f32[128,128], index: 3, kind: input, shape index: {}]   ;;  %s2036_s4 = inlined_call_operand.vmem [shape: f32[1,128], index: 4, kind: input, shape index: {}]   ;;  %s2037_s5 = inlined_call_operand.vmem [shape: f32[1,128], index: 5, kind: input, shape index: {}]   ;;  %s2038_s6 = inlined_call_operand.<no memory space> [shape: f32[1,1], index: 6, kind: input, shape index: {}]   ;;  %s2039_s7 = inlined_call_operand.vmem [shape: f32[512,1], index: 7, kind: output, shape index: {}]  }
   0x1   :  { %12 = sst [smem:[#allocation2]] %s2038_s6 }
   0x2 LB: > { %s1187_s27 = sadd.s32 4294967295, %s1635_s26   ;;  %p1191_p0 = scmp.ge.s32.totalorder %s1635_s26, 1  ;;  %s1635_s26 = sphi %s1680_s26, %s18_s26  }
   0x3   : > { %p239_p1 = scmp.lt.s32.totalorder %s1635_s26, 3 }
   0x5   : > { %p240_p2 = pnand %p1191_p0, %p239_p1 }
   0x6   : > { %v315_v0 = vld [vmem:[%s2033_s1] sm:$0xf] (!%p240_p2)  ;;  %vm420_vm0 = vcmask (!%p240_p2), 1043456   ;;  %s1192_s6 = sshll.u32 (!%p240_p2), %s1187_s27, 5  ;;  %v682_v2 = vld [vmem:[%s2035_s3 + $0x8] sm:$0xff] (!%p240_p2)  ;;  %v683_v3 = vld [vmem:[%s2035_s3 + $0x10] sm:$0xff] (!%p240_p2) }
   0x7   : > { %243 = sbr.rel (%p240_p2) target bundleno = 682 (0x2aa), region = 48  ;;  %v681_v1 = vld [vmem:[%s2035_s3] sm:$0xff] (!%p240_p2)  ;;  %1315 = vmatprep.subr.msk.mxu0 (!%p240_p2), %vm420_vm0, %v315_v0  ;;  %p272_p3 = scmp.lt.s32.totalorder (!%p240_p2), %s1192_s6, 63  ;;  %v684_v4 = vld [vmem:[%s2035_s3 + $0x18] sm:$0xff] (!%p240_p2)  ;;  %vm323_vm1 = vcmask (!%p240_p2), 31744   ;;  %v686_v8 = vld [vmem:[%s2035_s3 + $0x28] sm:$0xff] (!%p240_p2) }
   0x8   : > { %1316 = vmatpush3.msk.msra.mxu0 (!%p240_p2), %vm420_vm0, %v315_v0  ;;  %v1445_v5 = vpack.c.bf16 (!%p240_p2), %v682_v2, %v681_v1  ;;  %v1449_v6 = vpack.c.bf16 (!%p240_p2), %v684_v4, %v683_v3  ;;  %v685_v7 = vld [vmem:[%s2035_s3 + $0x20] sm:$0xff] (!%p240_p2)  ;;  %v687_v14 = vld [vmem:[%s2035_s3 + $0x30] sm:$0xff] (!%p240_p2)  ;;  %v688_v15 = vld [vmem:[%s2035_s3 + $0x38] sm:$0xff] (!%p240_p2)  ;;  %s1064_s29 = sld [smem:[#allocation2]] (!%p240_p2)  ;;  %vm1098_vm2 = vcmask (!%p240_p2), 7168  }
   0x9   : > { %v1453_v12 = vpack.c.bf16 (!%p240_p2), %v686_v8, %v685_v7  ;;  %v1457_v17 = vpack.c.bf16 (!%p240_p2), %v688_v15, %v687_v14  ;;  %v689_v19 = vld [vmem:[%s2035_s3 + $0x40] sm:$0xff] (!%p240_p2)  ;;  %v690_v20 = vld [vmem:[%s2035_s3 + $0x48] sm:$0xff] (!%p240_p2)  ;;  %v691_v24 = vld [vmem:[%s2035_s3 + $0x50] sm:$0xff] (!%p240_p2) }
   0xa   : > { %1446 = vmatprep.subr.bf16.mxu0 (!%p240_p2), %v1445_v5  ;;  %1477 = vmatprep.subr.bf16.mxu1 (!%p240_p2), %v1445_v5  ;;  %v1461_v22 = vpack.c.bf16 (!%p240_p2), %v690_v20, %v689_v19  ;;  %v692_v25 = vld [vmem:[%s2035_s3 + $0x58] sm:$0xff] (!%p240_p2)  ;;  %v693_v29 = vld [vmem:[%s2035_s3 + $0x60] sm:$0xff] (!%p240_p2)  ;;  %v694_v30 = vld [vmem:[%s2035_s3 + $0x68] sm:$0xff] (!%p240_p2) }
   0xb   : > { %1485 = vmatpush3.bf16.msra.mxu1 (!%p240_p2), %v1445_v5  ;;  %v1465_v27 = vpack.c.bf16 (!%p240_p2), %v692_v25, %v691_v24  ;;  %v1469_v32 = vpack.c.bf16 (!%p240_p2), %v694_v30, %v693_v29  ;;  %v695_v54 = vld [vmem:[%s2035_s3 + $0x70] sm:$0xff] (!%p240_p2)  ;;  %v696_v55 = vld [vmem:[%s2035_s3 + $0x78] sm:$0xff] (!%p240_p2)  ;;  %v1816_v57 = vld [vmem:[%s2034_s2] ss:$0 sm:$0xff] (!%p240_p2) }
   0xc   : > { %1478 = vmatprep.subr.bf16.mxu1 (!%p240_p2), %v1449_v6  ;;  %v1473_v56 = vpack.c.bf16 (!%p240_p2), %v696_v55, %v695_v54 }
   0xe   : > { %s2041_s6 = smov (!%p272_p3, %s1192_s6), 63 }
   0xf   : > { %s1193_s15 = sshll.u32 %s2041_s6, 3  ;;  %1486 = vmatpush3.bf16.msra.mxu1 %v1449_v6 }
  0x10   : > { %s1711_s18 = scalar_lea.vmem %s2032_s0, %s1193_s15  ;;  %1479 = vmatprep.subr.bf16.mxu1 %v1453_v12  ;;  %s1931_s9 = scalar_lea.vmem %s2039_s7, %s1193_s15 }
  0x11   : > { %v283_v9 = vld [vmem:[%s1711_s18] sm:$0xff]  ;;  %v284_v10 = vld [vmem:[%s1711_s18 + $0x8] sm:$0xff]  ;;  %v285_v11 = vld [vmem:[%s1711_s18 + $0x10] sm:$0xff] }
  0x12   : > { %1317 = vmatprep.mubr.msk.f32.mxu0 %vm323_vm1, %v283_v9  ;;  %v286_v13 = vld [vmem:[%s1711_s18 + $0x18] sm:$0xff]  ;;  %v287_v16 = vld [vmem:[%s1711_s18 + $0x20] sm:$0xff]  ;;  %v288_v18 = vld [vmem:[%s1711_s18 + $0x28] sm:$0xff] }
  0x13   : > { %1318 = vmatmul.mubr.msk.f32.vlgmr.msra.gmra.mrb[0].mxu0 %vm323_vm1, %v284_v10  ;;  %1487 = vmatpush3.bf16.msra.mxu1 %v1453_v12  ;;  %v289_v21 = vld [vmem:[%s1711_s18 + $0x30] sm:$0xff]  ;;  %v290_v23 = vld [vmem:[%s1711_s18 + $0x38] sm:$0xff]  ;;  %v291_v26 = vld [vmem:[%s1711_s18 + $0x40] sm:$0xff] }
  0x14   : > { %1320 = vmatprep.mubr.msk.f32.mxu0 %vm323_vm1, %v285_v11  ;;  %1448 = vmatpush3.bf16.msra.mxu0 %v1445_v5  ;;  %v292_v28 = vld [vmem:[%s1711_s18 + $0x48] sm:$0xff]  ;;  %v293_v31 = vld [vmem:[%s1711_s18 + $0x50] sm:$0xff]  ;;  %v294_v33 = vld [vmem:[%s1711_s18 + $0x58] sm:$0xff] }
  0x15   : > { %1450 = vmatprep.subr.bf16.mxu0 %v1449_v6  ;;  %1480 = vmatprep.subr.bf16.mxu1 %v1457_v17  ;;  %v295_v34 = vld [vmem:[%s1711_s18 + $0x60] sm:$0xff]  ;;  %v296_v35 = vld [vmem:[%s1711_s18 + $0x68] sm:$0xff]  ;;  %v297_v36 = vld [vmem:[%s1711_s18 + $0x70] sm:$0xff] }
  0x16   : > { %v298_v37 = vld [vmem:[%s1711_s18 + $0x78] sm:$0xff]  ;;  %v299_v38 = vld [vmem:[%s1711_s18 + $0x80] sm:$0xff]  ;;  %v300_v39 = vld [vmem:[%s1711_s18 + $0x88] sm:$0xff] }
  0x17   : > { %1321 = vmatmul.mubr.msk.f32.gmra.mrb[2].mxu0 %vm323_vm1, %v286_v13  ;;  %1488 = vmatpush3.bf16.msra.mxu1 %v1457_v17  ;;  %v301_v40 = vld [vmem:[%s1711_s18 + $0x90] sm:$0xff]  ;;  %v302_v41 = vld [vmem:[%s1711_s18 + $0x98] sm:$0xff]  ;;  %v303_v42 = vld [vmem:[%s1711_s18 + $0xa0] sm:$0xff] }
  0x18   : > { %1323 = vmatprep.mubr.msk.f32.mxu0 %vm323_vm1, %v287_v16  ;;  %1452 = vmatpush3.bf16.msra.mxu0 %v1449_v6  ;;  %v304_v43 = vld [vmem:[%s1711_s18 + $0xa8] sm:$0xff]  ;;  %v305_v44 = vld [vmem:[%s1711_s18 + $0xb0] sm:$0xff]  ;;  %v306_v45 = vld [vmem:[%s1711_s18 + $0xb8] sm:$0xff] }
  0x19   : > { %1454 = vmatprep.subr.bf16.mxu0 %v1453_v12  ;;  %1481 = vmatprep.subr.bf16.mxu1 %v1461_v22  ;;  %v307_v46 = vld [vmem:[%s1711_s18 + $0xc0] sm:$0xff]  ;;  %v308_v47 = vld [vmem:[%s1711_s18 + $0xc8] sm:$0xff]  ;;  %v309_v48 = vld [vmem:[%s1711_s18 + $0xd0] sm:$0xff] }
  0x1a   : > { %v310_v49 = vld [vmem:[%s1711_s18 + $0xd8] sm:$0xff]  ;;  %v311_v50 = vld [vmem:[%s1711_s18 + $0xe0] sm:$0xff]  ;;  %v312_v51 = vld [vmem:[%s1711_s18 + $0xe8] sm:$0xff] }
  0x1b   : > { %1324 = vmatmul.mubr.msk.f32.gmra.mrb[4].mxu0 %vm323_vm1, %v288_v18  ;;  %1489 = vmatpush3.bf16.msra.mxu1 %v1461_v22  ;;  %v313_v52 = vld [vmem:[%s1711_s18 + $0xf0] sm:$0xff]  ;;  %v314_v53 = vld [vmem:[%s1711_s18 + $0xf8] sm:$0xff] }
  0x1c   : > { %1326 = vmatprep.mubr.msk.f32.mxu0 %vm323_vm1, %v289_v21  ;;  %1456 = vmatpush3.bf16.msra.mxu0 %v1453_v12 }
  0x1d   : > { %1458 = vmatprep.subr.bf16.mxu0 %v1457_v17  ;;  %1482 = vmatprep.subr.bf16.mxu1 %v1465_v27 }
  0x1f   : > { %1327 = vmatmul.mubr.msk.f32.gmra.mrb[6].mxu0 %vm323_vm1, %v290_v23  ;;  %1490 = vmatpush3.bf16.msra.mxu1 %v1465_v27 }
  0x20   : > { %1329 = vmatprep.mubr.msk.f32.mxu0 %vm323_vm1, %v291_v26  ;;  %1460 = vmatpush3.bf16.msra.mxu0 %v1457_v17 }
  0x21   : > { %1462 = vmatprep.subr.bf16.mxu0 %v1461_v22  ;;  %1483 = vmatprep.subr.bf16.mxu1 %v1469_v32 }
  0x23   : > { %1330 = vmatmul.mubr.msk.f32.gmra.mrb[8].mxu0 %vm323_vm1, %v292_v28  ;;  %1491 = vmatpush3.bf16.msra.mxu1 %v1469_v32 }
  0x24   : > { %1332 = vmatprep.mubr.msk.f32.mxu0 %vm323_vm1, %v293_v31  ;;  %1464 = vmatpush3.bf16.msra.mxu0 %v1461_v22 }
  0x25   : > { %1466 = vmatprep.subr.bf16.mxu0 %v1465_v27  ;;  %1484 = vmatprep.subr.bf16.mxu1 %v1473_v56 }
  0x27   : > { %1333 = vmatmul.mubr.msk.f32.gmra.mrb[10].mxu0 %vm323_vm1, %v294_v33  ;;  %1492 = vmatpush3.bf16.msra.mxu1 %v1473_v56 }
  0x28   : > { %1335 = vmatprep.mubr.msk.f32.mxu0 %vm323_vm1, %v295_v34  ;;  %1468 = vmatpush3.bf16.msra.mxu0 %v1465_v27 }
  0x29   : > { %1470 = vmatprep.subr.bf16.mxu0 %v1469_v32 }
  0x2b   : > { %1336 = vmatmul.mubr.msk.f32.gmra.mrb[12].mxu0 %vm323_vm1, %v296_v35 }
  0x2c   : > { %1338 = vmatprep.mubr.msk.f32.mxu0 %vm323_vm1, %v297_v36  ;;  %1472 = vmatpush3.bf16.msra.mxu0 %v1469_v32 }
  0x2d   : > { %1474 = vmatprep.subr.bf16.mxu0 %v1473_v56 }
  0x2f   : > { %1339 = vmatmul.mubr.msk.f32.gmra.mrb[14].mxu0 %vm323_vm1, %v298_v37 }
  0x30   : > { %1341 = vmatprep.mubr.msk.f32.mxu0 %vm323_vm1, %v299_v38  ;;  %1476 = vmatpush3.bf16.msra.mxu0 %v1473_v56 }
  0x33   : > { %1342 = vmatmul.mubr.msk.f32.gmra.mrb[16].mxu0 %vm323_vm1, %v300_v39 }
  0x34   : > { %1344 = vmatprep.mubr.msk.f32.mxu0 %vm323_vm1, %v301_v40 }
  0x37   : > { %1345 = vmatmul.mubr.msk.f32.gmra.mrb[18].mxu0 %vm323_vm1, %v302_v41 }
  0x38   : > { %1347 = vmatprep.mubr.msk.f32.mxu0 %vm323_vm1, %v303_v42 }
  0x3b   : > { %1348 = vmatmul.mubr.msk.f32.gmra.mrb[20].mxu0 %vm323_vm1, %v304_v43 }
  0x3c   : > { %1350 = vmatprep.mubr.msk.f32.mxu0 %vm323_vm1, %v305_v44 }
  0x3f   : > { %1351 = vmatmul.mubr.msk.f32.gmra.mrb[22].mxu0 %vm323_vm1, %v306_v45 }
  0x40   : > { %1353 = vmatprep.mubr.msk.f32.mxu0 %vm323_vm1, %v307_v46 }
  0x43   : > { %1354 = vmatmul.mubr.msk.f32.gmra.mrb[24].mxu0 %vm323_vm1, %v308_v47 }
  0x44   : > { %1356 = vmatprep.mubr.msk.f32.mxu0 %vm323_vm1, %v309_v48 }
  0x47   : > { %1357 = vmatmul.mubr.msk.f32.gmra.mrb[26].mxu0 %vm323_vm1, %v310_v49 }
  0x48   : > { %1359 = vmatprep.mubr.msk.f32.mxu0 %vm323_vm1, %v311_v50 }
  0x4b   : > { %1360 = vmatmul.mubr.msk.f32.gmra.mrb[28].mxu0 %vm323_vm1, %v312_v51 }
  0x4c   : > { %1362 = vmatprep.mubr.msk.f32.mxu0 %vm323_vm1, %v313_v52 }
  0x4f   : > { %1363 = vmatmul.mubr.msk.f32.gmra.mrb[30].mxu0 %vm323_vm1, %v314_v53 }
  0xe6   : > { %v1319_v58 = vpop.f32.mrb[0].mxu0 }
  0xe7   : > { %v496_v59 = vadd.f32 %v1319_v58, %v1816_v57  ;;  %v490_v60 = vpop.f32.mrb[1].mxu0 }
  0xe8   : > { %v491_v61 = vadd.f32 %v1816_v57, %v490_v60 }
  0xea   : > { %1501 = vtanh.f32 %v491_v61  ;;  %v1322_v62 = vpop.f32.mrb[2].mxu0 }
  0xeb   : > { %1503 = vtanh.f32 %v496_v59  ;;  %v506_v63 = vadd.f32 %v1322_v62, %v1816_v57  ;;  %v500_v0 = vpop.f32.mrb[3].mxu0 }
  0xec   : > { %v501_v1 = vadd.f32 %v1816_v57, %v500_v0 }
  0xee   : > { %1505 = vtanh.f32 %v501_v1  ;;  %v1325_v2 = vpop.f32.mrb[4].mxu0 }
  0xef   : > { %1507 = vtanh.f32 %v506_v63  ;;  %v516_v3 = vadd.f32 %v1325_v2, %v1816_v57  ;;  %v510_v4 = vpop.f32.mrb[5].mxu0 }
  0xf0   : > { %v511_v5 = vadd.f32 %v1816_v57, %v510_v4 }
  0xf1   : > { %1509 = vtanh.f32 %v516_v3 }
  0xf2   : > { %1511 = vtanh.f32 %v511_v5  ;;  %v1328_v6 = vpop.f32.mrb[6].mxu0 }
  0xf3   : > { %v526_v7 = vadd.f32 %v1328_v6, %v1816_v57  ;;  %v520_v8 = vpop.f32.mrb[7].mxu0 }
  0xf4   : > { %v1502_v9 = vpop.eup %1501  ;;  %v521_v10 = vadd.f32 %v1816_v57, %v520_v8 }
  0xf5   : > { %v1504_v11 = vpop.eup %1503  ;;  %1513 = vtanh.f32 %v526_v7  ;;  %1397 = vmatprep.mubr.f32.mxu0 %v1502_v9 }
  0xf6   : > { %1515 = vtanh.f32 %v521_v10  ;;  %v1331_v12 = vpop.f32.mrb[8].mxu0  ;;  %1398 = vmatmul.mubr.f32.vlgmr.msra.gmra.mrb[32].mxu0 %v1504_v11 }
  0xf7   : > { %v536_v13 = vadd.f32 %v1331_v12, %v1816_v57  ;;  %v530_v14 = vpop.f32.mrb[9].mxu0 }
  0xf8   : > { %v1506_v15 = vpop.eup %1505  ;;  %v531_v16 = vadd.f32 %v1816_v57, %v530_v14 }
  0xf9   : > { %v1508_v17 = vpop.eup %1507  ;;  %1517 = vtanh.f32 %v536_v13  ;;  %1400 = vmatprep.mubr.f32.mxu0 %v1506_v15 }
  0xfa   : > { %1519 = vtanh.f32 %v531_v16  ;;  %v1334_v18 = vpop.f32.mrb[10].mxu0  ;;  %1401 = vmatmul.mubr.f32.gmra.mrb[34].mxu0 %v1508_v17 }
  0xfb   : > { %v1510_v19 = vpop.eup %1509  ;;  %v546_v20 = vadd.f32 %v1334_v18, %v1816_v57  ;;  %v540_v21 = vpop.f32.mrb[11].mxu0 }
  0xfc   : > { %v1512_v22 = vpop.eup %1511  ;;  %v541_v23 = vadd.f32 %v1816_v57, %v540_v21 }
  0xfd   : > { %1521 = vtanh.f32 %v546_v20  ;;  %1403 = vmatprep.mubr.f32.mxu0 %v1512_v22 }
  0xfe   : > { %1523 = vtanh.f32 %v541_v23  ;;  %v1337_v24 = vpop.f32.mrb[12].mxu0  ;;  %1404 = vmatmul.mubr.f32.gmra.mrb[36].mxu0 %v1510_v19 }
  0xff   : > { %v1514_v25 = vpop.eup %1513  ;;  %v556_v26 = vadd.f32 %v1337_v24, %v1816_v57  ;;  %v550_v27 = vpop.f32.mrb[13].mxu0 }
 0x100   : > { %v1516_v28 = vpop.eup %1515  ;;  %v551_v29 = vadd.f32 %v1816_v57, %v550_v27 }
 0x101   : > { %1525 = vtanh.f32 %v556_v26  ;;  %1406 = vmatprep.mubr.f32.mxu1 %v1516_v28 }
 0x102   : > { %1527 = vtanh.f32 %v551_v29  ;;  %v1340_v30 = vpop.f32.mrb[14].mxu0  ;;  %1407 = vmatmul.mubr.f32.vlgmr.msra.gmra.mrb[0].mxu1 %v1514_v25 }
 0x103   : > { %v1518_v31 = vpop.eup %1517  ;;  %v566_v32 = vadd.f32 %v1340_v30, %v1816_v57  ;;  %v560_v33 = vpop.f32.mrb[15].mxu0 }
 0x104   : > { %v1520_v34 = vpop.eup %1519  ;;  %v561_v35 = vadd.f32 %v1816_v57, %v560_v33 }
 0x105   : > { %1529 = vtanh.f32 %v566_v32  ;;  %1409 = vmatprep.mubr.f32.mxu1 %v1520_v34 }
 0x106   : > { %1531 = vtanh.f32 %v561_v35  ;;  %v1343_v36 = vpop.f32.mrb[16].mxu0  ;;  %1410 = vmatmul.mubr.f32.gmra.mrb[2].mxu1 %v1518_v31 }
 0x107   : > { %v1522_v37 = vpop.eup %1521  ;;  %v576_v38 = vadd.f32 %v1343_v36, %v1816_v57  ;;  %v570_v39 = vpop.f32.mrb[17].mxu0 }
 0x108   : > { %v1524_v40 = vpop.eup %1523  ;;  %v571_v41 = vadd.f32 %v1816_v57, %v570_v39  ;;  %v1864_v39 = vld [vmem:[%s2037_s5] ss:$0 sm:$0xff] }
 0x109   : > { %1533 = vtanh.f32 %v576_v38  ;;  %1412 = vmatprep.mubr.f32.mxu1 %v1524_v40 }
 0x10a   : > { %1535 = vtanh.f32 %v571_v41  ;;  %v1346_v42 = vpop.f32.mrb[18].mxu0  ;;  %1413 = vmatmul.mubr.f32.gmra.mrb[4].mxu1 %v1522_v37 }
 0x10b   : > { %v1526_v43 = vpop.eup %1525  ;;  %v586_v44 = vadd.f32 %v1346_v42, %v1816_v57  ;;  %v580_v45 = vpop.f32.mrb[19].mxu0 }
 0x10c   : > { %v1528_v46 = vpop.eup %1527  ;;  %v581_v47 = vadd.f32 %v1816_v57, %v580_v45 }
 0x10d   : > { %1537 = vtanh.f32 %v586_v44  ;;  %1415 = vmatprep.mubr.f32.mxu1 %v1528_v46 }
 0x10e   : > { %1539 = vtanh.f32 %v581_v47  ;;  %v1349_v48 = vpop.f32.mrb[20].mxu0  ;;  %1416 = vmatmul.mubr.f32.gmra.mrb[6].mxu1 %v1526_v43 }
 0x10f   : > { %v1530_v49 = vpop.eup %1529  ;;  %v596_v50 = vadd.f32 %v1349_v48, %v1816_v57  ;;  %v590_v51 = vpop.f32.mrb[21].mxu0 }
 0x110   : > { %v1532_v52 = vpop.eup %1531  ;;  %v591_v53 = vadd.f32 %v1816_v57, %v590_v51 }
 0x111   : > { %1541 = vtanh.f32 %v596_v50  ;;  %1418 = vmatprep.mubr.f32.mxu1 %v1532_v52 }
 0x112   : > { %1543 = vtanh.f32 %v591_v53  ;;  %v1352_v54 = vpop.f32.mrb[22].mxu0  ;;  %1419 = vmatmul.mubr.f32.gmra.mrb[8].mxu1 %v1530_v49 }
 0x113   : > { %v1534_v55 = vpop.eup %1533  ;;  %v606_v56 = vadd.f32 %v1352_v54, %v1816_v57  ;;  %v600_v58 = vpop.f32.mrb[23].mxu0 }
 0x114   : > { %v1536_v59 = vpop.eup %1535  ;;  %v601_v60 = vadd.f32 %v1816_v57, %v600_v58 }
 0x115   : > { %1545 = vtanh.f32 %v606_v56  ;;  %1421 = vmatprep.mubr.f32.mxu1 %v1536_v59 }
 0x116   : > { %1547 = vtanh.f32 %v601_v60  ;;  %v1355_v61 = vpop.f32.mrb[24].mxu0  ;;  %1422 = vmatmul.mubr.f32.gmra.mrb[10].mxu1 %v1534_v55 }
 0x117   : > { %v1538_v62 = vpop.eup %1537  ;;  %v616_v63 = vadd.f32 %v1355_v61, %v1816_v57  ;;  %v610_v0 = vpop.f32.mrb[25].mxu0 }
 0x118   : > { %v1540_v1 = vpop.eup %1539  ;;  %v611_v2 = vadd.f32 %v1816_v57, %v610_v0 }
 0x119   : > { %1549 = vtanh.f32 %v616_v63  ;;  %1424 = vmatprep.mubr.f32.mxu1 %v1540_v1 }
 0x11a   : > { %1551 = vtanh.f32 %v611_v2  ;;  %v1358_v3 = vpop.f32.mrb[26].mxu0  ;;  %1425 = vmatmul.mubr.f32.gmra.mrb[12].mxu1 %v1538_v62 }
 0x11b   : > { %v1542_v4 = vpop.eup %1541  ;;  %v626_v5 = vadd.f32 %v1358_v3, %v1816_v57  ;;  %v620_v6 = vpop.f32.mrb[27].mxu0 }
 0x11c   : > { %v1544_v7 = vpop.eup %1543  ;;  %v621_v8 = vadd.f32 %v1816_v57, %v620_v6 }
 0x11d   : > { %1553 = vtanh.f32 %v626_v5  ;;  %1427 = vmatprep.mubr.f32.mxu1 %v1544_v7 }
 0x11e   : > { %1555 = vtanh.f32 %v621_v8  ;;  %v1361_v9 = vpop.f32.mrb[28].mxu0  ;;  %1428 = vmatmul.mubr.f32.gmra.mrb[14].mxu1 %v1542_v4 }
 0x11f   : > { %v1546_v10 = vpop.eup %1545  ;;  %v636_v11 = vadd.f32 %v1361_v9, %v1816_v57  ;;  %v630_v12 = vpop.f32.mrb[29].mxu0 }
 0x120   : > { %v1548_v13 = vpop.eup %1547  ;;  %v631_v14 = vadd.f32 %v1816_v57, %v630_v12 }
 0x121   : > { %1557 = vtanh.f32 %v636_v11  ;;  %1430 = vmatprep.mubr.f32.mxu1 %v1548_v13 }
 0x122   : > { %1559 = vtanh.f32 %v631_v14  ;;  %v1364_v15 = vpop.f32.mrb[30].mxu0  ;;  %1431 = vmatmul.mubr.f32.gmra.mrb[16].mxu1 %v1546_v10 }
 0x123   : > { %v1550_v16 = vpop.eup %1549  ;;  %v646_v17 = vadd.f32 %v1364_v15, %v1816_v57  ;;  %v640_v18 = vpop.f32.mrb[31].mxu0 }
 0x124   : > { %v1552_v19 = vpop.eup %1551  ;;  %v641_v20 = vadd.f32 %v1816_v57, %v640_v18  ;;  %v1853_v57 = vld [vmem:[%s2036_s4] ss:$0 sm:$0xff] }
 0x125   : > { %1561 = vtanh.f32 %v646_v17  ;;  %1433 = vmatprep.mubr.f32.mxu1 %v1552_v19 }
 0x126   : > { %1563 = vtanh.f32 %v641_v20  ;;  %1434 = vmatmul.mubr.f32.gmra.mrb[18].mxu1 %v1550_v16 }
 0x127   : > { %v1554_v21 = vpop.eup %1553 }
 0x128   : > { %v1556_v22 = vpop.eup %1555 }
 0x129   : > { %1436 = vmatprep.mubr.f32.mxu1 %v1556_v22 }
 0x12a   : > { %1437 = vmatmul.mubr.f32.gmra.mrb[20].mxu1 %v1554_v21 }
 0x12b   : > { %v1558_v23 = vpop.eup %1557 }
 0x12c   : > { %v1560_v24 = vpop.eup %1559 }
 0x12d   : > { %1439 = vmatprep.mubr.f32.mxu1 %v1560_v24 }
 0x12e   : > { %1440 = vmatmul.mubr.f32.gmra.mrb[22].mxu1 %v1558_v23 }
 0x12f   : > { %v1562_v25 = vpop.eup %1561 }
 0x130   : > { %v1564_v26 = vpop.eup %1563 }
 0x131   : > { %1442 = vmatprep.mubr.f32.mxu1 %v1564_v26 }
 0x132   : > { %1443 = vmatmul.mubr.f32.gmra.mrb[24].mxu1 %v1562_v25 }
 0x1c9   : > { %v1399_v27 = vpop.f32.mrb[32].mxu0 }
 0x1ca   : > { %v776_v28 = vadd.f32 %v1399_v27, %v1853_v57  ;;  %v770_v29 = vpop.f32.mrb[33].mxu0 }
 0x1cb   : > { %v771_v30 = vadd.f32 %v1853_v57, %v770_v29 }
 0x1cc   : > { %1565 = vtanh.f32 %v776_v28 }
 0x1cd   : > { %v1402_v31 = vpop.f32.mrb[34].mxu0  ;;  %1567 = vtanh.f32 %v771_v30 }
 0x1ce   : > { %v786_v32 = vadd.f32 %v1402_v31, %v1853_v57  ;;  %v780_v33 = vpop.f32.mrb[35].mxu0 }
 0x1cf   : > { %v781_v34 = vadd.f32 %v1853_v57, %v780_v33 }
 0x1d0   : > { %1569 = vtanh.f32 %v786_v32 }
 0x1d1   : > { %v1405_v35 = vpop.f32.mrb[36].mxu0  ;;  %1571 = vtanh.f32 %v781_v34 }
 0x1d2   : > { %v796_v36 = vadd.f32 %v1405_v35, %v1853_v57  ;;  %v790_v37 = vpop.f32.mrb[37].mxu0 }
 0x1d3   : > { %v791_v38 = vadd.f32 %v1853_v57, %v790_v37 }
 0x1d5   : > { %1573 = vtanh.f32 %v791_v38  ;;  %v1408_v40 = vpop.f32.mrb[0].mxu1 }
 0x1d6   : > { %v1566_v41 = vpop.eup %1565  ;;  %1575 = vtanh.f32 %v796_v36  ;;  %v806_v42 = vadd.f32 %v1408_v40, %v1853_v57  ;;  %v800_v43 = vpop.f32.mrb[1].mxu1 }
 0x1d7   : > { %v801_v44 = vadd.f32 %v1853_v57, %v800_v43  ;;  %v969_v45 = vmul.f32 %v1566_v41, %v1864_v39  ;;  %v1568_v46 = vpop.eup %1567 }
 0x1d8   : > { %v968_v53 = vmul.f32 %v1568_v46, %v1864_v39 }
 0x1d9   : > { %1577 = vtanh.f32 %v801_v44  ;;  %v1411_v47 = vpop.f32.mrb[2].mxu1  ;;  %1002 = vadd.xlane.f32.xlu0 %v969_v45 }
 0x1da   : > { %v1570_v48 = vpop.eup %1569  ;;  %1579 = vtanh.f32 %v806_v42  ;;  %v816_v49 = vadd.f32 %v1411_v47, %v1853_v57  ;;  %v810_v50 = vpop.f32.mrb[3].mxu1 }
 0x1db   : > { %v811_v51 = vadd.f32 %v1853_v57, %v810_v50  ;;  %v971_v52 = vmul.f32 %v1570_v48, %v1864_v39  ;;  %v1572_v54 = vpop.eup %1571 }
 0x1dc   : > { %v970_v61 = vmul.f32 %v1572_v54, %v1864_v39 }
 0x1dd   : > { %1581 = vtanh.f32 %v811_v51  ;;  %v1414_v55 = vpop.f32.mrb[4].mxu1  ;;  %1006 = vadd.xlane.f32.xlu1 %v971_v52  ;;  %1000 = vadd.xlane.f32.xlu0 %v968_v53 }
 0x1de   : > { %1583 = vtanh.f32 %v816_v49  ;;  %v826_v56 = vadd.f32 %v1414_v55, %v1853_v57  ;;  %v820_v58 = vpop.f32.mrb[5].mxu1 }
 0x1df   : > { %v1574_v59 = vpop.eup %1573  ;;  %v821_v60 = vadd.f32 %v1853_v57, %v820_v58 }
 0x1e0   : > { %v1576_v62 = vpop.eup %1575  ;;  %v972_v63 = vmul.f32 %v1574_v59, %v1864_v39 }
 0x1e1   : > { %1585 = vtanh.f32 %v821_v60  ;;  %v1417_v0 = vpop.f32.mrb[6].mxu1  ;;  %1004 = vadd.xlane.f32.xlu1 %v970_v61  ;;  %v973_v5 = vmul.f32 %v1576_v62, %v1864_v39 }
 0x1e2   : > { %1587 = vtanh.f32 %v826_v56  ;;  %v836_v1 = vadd.f32 %v1417_v0, %v1853_v57  ;;  %v830_v2 = vpop.f32.mrb[7].mxu1  ;;  %1008 = vadd.xlane.f32.xlu0 %v972_v63 }
 0x1e3   : > { %v1578_v3 = vpop.eup %1577  ;;  %v831_v4 = vadd.f32 %v1853_v57, %v830_v2 }
 0x1e4   : > { %v1580_v6 = vpop.eup %1579  ;;  %v974_v7 = vmul.f32 %v1578_v3, %v1864_v39 }
 0x1e5   : > { %1589 = vtanh.f32 %v831_v4  ;;  %v1420_v8 = vpop.f32.mrb[8].mxu1  ;;  %1010 = vadd.xlane.f32.xlu1 %v973_v5  ;;  %v975_v13 = vmul.f32 %v1580_v6, %v1864_v39 }
 0x1e6   : > { %1591 = vtanh.f32 %v836_v1  ;;  %v846_v9 = vadd.f32 %v1420_v8, %v1853_v57  ;;  %v840_v10 = vpop.f32.mrb[9].mxu1  ;;  %1012 = vadd.xlane.f32.xlu0 %v974_v7 }
 0x1e7   : > { %v1582_v11 = vpop.eup %1581  ;;  %v841_v12 = vadd.f32 %v1853_v57, %v840_v10 }
 0x1e8   : > { %v1584_v14 = vpop.eup %1583  ;;  %v976_v15 = vmul.f32 %v1582_v11, %v1864_v39 }
 0x1e9   : > { %1593 = vtanh.f32 %v841_v12  ;;  %v1423_v16 = vpop.f32.mrb[10].mxu1  ;;  %1014 = vadd.xlane.f32.xlu1 %v975_v13  ;;  %v977_v21 = vmul.f32 %v1584_v14, %v1864_v39 }
 0x1ea   : > { %1595 = vtanh.f32 %v846_v9  ;;  %v856_v17 = vadd.f32 %v1423_v16, %v1853_v57  ;;  %v850_v18 = vpop.f32.mrb[11].mxu1  ;;  %1016 = vadd.xlane.f32.xlu0 %v976_v15 }
 0x1eb   : > { %v1586_v19 = vpop.eup %1585  ;;  %v851_v20 = vadd.f32 %v1853_v57, %v850_v18 }
 0x1ec   : > { %v1588_v22 = vpop.eup %1587  ;;  %v978_v23 = vmul.f32 %v1586_v19, %v1864_v39 }
 0x1ed   : > { %1597 = vtanh.f32 %v851_v20  ;;  %v1426_v24 = vpop.f32.mrb[12].mxu1  ;;  %1018 = vadd.xlane.f32.xlu1 %v977_v21  ;;  %v979_v29 = vmul.f32 %v1588_v22, %v1864_v39 }
 0x1ee   : > { %1599 = vtanh.f32 %v856_v17  ;;  %v866_v25 = vadd.f32 %v1426_v24, %v1853_v57  ;;  %v860_v26 = vpop.f32.mrb[13].mxu1  ;;  %1020 = vadd.xlane.f32.xlu0 %v978_v23 }
 0x1ef   : > { %v1590_v27 = vpop.eup %1589  ;;  %v861_v28 = vadd.f32 %v1853_v57, %v860_v26 }
 0x1f0   : > { %v1592_v30 = vpop.eup %1591  ;;  %v980_v31 = vmul.f32 %v1590_v27, %v1864_v39 }
 0x1f1   : > { %1601 = vtanh.f32 %v861_v28  ;;  %v1429_v32 = vpop.f32.mrb[14].mxu1  ;;  %1022 = vadd.xlane.f32.xlu1 %v979_v29  ;;  %v981_v37 = vmul.f32 %v1592_v30, %v1864_v39  ;;  %v1924_v30 = vstv %s1064_s29 }
 0x1f2   : > { %1603 = vtanh.f32 %v866_v25  ;;  %v876_v33 = vadd.f32 %v1429_v32, %v1853_v57  ;;  %v870_v34 = vpop.f32.mrb[15].mxu1  ;;  %1024 = vadd.xlane.f32.xlu0 %v980_v31 }
 0x1f3   : > { %v1594_v35 = vpop.eup %1593  ;;  %v871_v36 = vadd.f32 %v1853_v57, %v870_v34 }
 0x1f4   : > { %v1596_v38 = vpop.eup %1595  ;;  %v982_v40 = vmul.f32 %v1594_v35, %v1864_v39 }
 0x1f5   : > { %1605 = vtanh.f32 %v871_v36  ;;  %v1432_v41 = vpop.f32.mrb[16].mxu1  ;;  %1026 = vadd.xlane.f32.xlu1 %v981_v37  ;;  %v983_v46 = vmul.f32 %v1596_v38, %v1864_v39 }
 0x1f6   : > { %1607 = vtanh.f32 %v876_v33  ;;  %v886_v42 = vadd.f32 %v1432_v41, %v1853_v57  ;;  %v880_v43 = vpop.f32.mrb[17].mxu1  ;;  %1028 = vadd.xlane.f32.xlu0 %v982_v40 }
 0x1f7   : > { %v1598_v44 = vpop.eup %1597  ;;  %v881_v45 = vadd.f32 %v1853_v57, %v880_v43 }
 0x1f8   : > { %v1600_v47 = vpop.eup %1599  ;;  %v984_v48 = vmul.f32 %v1598_v44, %v1864_v39 }
 0x1f9   : > { %1609 = vtanh.f32 %v881_v45  ;;  %v1435_v49 = vpop.f32.mrb[18].mxu1  ;;  %1030 = vadd.xlane.f32.xlu1 %v983_v46  ;;  %v985_v54 = vmul.f32 %v1600_v47, %v1864_v39 }
 0x1fa   : > { %1611 = vtanh.f32 %v886_v42  ;;  %v896_v50 = vadd.f32 %v1435_v49, %v1853_v57  ;;  %v890_v51 = vpop.f32.mrb[19].mxu1  ;;  %1032 = vadd.xlane.f32.xlu0 %v984_v48 }
 0x1fb   : > { %v1602_v52 = vpop.eup %1601  ;;  %v891_v53 = vadd.f32 %v1853_v57, %v890_v51 }
 0x1fc   : > { %v1604_v55 = vpop.eup %1603  ;;  %v986_v56 = vmul.f32 %v1602_v52, %v1864_v39 }
 0x1fd   : > { %1613 = vtanh.f32 %v891_v53  ;;  %v1438_v58 = vpop.f32.mrb[20].mxu1  ;;  %1034 = vadd.xlane.f32.xlu1 %v985_v54  ;;  %v987_v63 = vmul.f32 %v1604_v55, %v1864_v39 }
 0x1fe   : > { %1615 = vtanh.f32 %v896_v50  ;;  %v906_v59 = vadd.f32 %v1438_v58, %v1853_v57  ;;  %v900_v60 = vpop.f32.mrb[21].mxu1  ;;  %1036 = vadd.xlane.f32.xlu0 %v986_v56 }
 0x1ff   : > { %v1606_v61 = vpop.eup %1605  ;;  %v901_v62 = vadd.f32 %v1853_v57, %v900_v60 }
 0x200   : > { %v1608_v0 = vpop.eup %1607  ;;  %v988_v1 = vmul.f32 %v1606_v61, %v1864_v39 }
 0x201   : > { %1617 = vtanh.f32 %v901_v62  ;;  %v1441_v2 = vpop.f32.mrb[22].mxu1  ;;  %1038 = vadd.xlane.f32.xlu1 %v987_v63  ;;  %v989_v7 = vmul.f32 %v1608_v0, %v1864_v39 }
 0x202   : > { %1619 = vtanh.f32 %v906_v59  ;;  %v916_v3 = vadd.f32 %v1441_v2, %v1853_v57  ;;  %v910_v4 = vpop.f32.mrb[23].mxu1  ;;  %1040 = vadd.xlane.f32.xlu0 %v988_v1 }
 0x203   : > { %v1610_v5 = vpop.eup %1609  ;;  %v911_v6 = vadd.f32 %v1853_v57, %v910_v4 }
 0x204   : > { %v1612_v8 = vpop.eup %1611  ;;  %v990_v9 = vmul.f32 %v1610_v5, %v1864_v39 }
 0x205   : > { %1621 = vtanh.f32 %v911_v6  ;;  %v1444_v10 = vpop.f32.mrb[24].mxu1  ;;  %1042 = vadd.xlane.f32.xlu1 %v989_v7  ;;  %v991_v15 = vmul.f32 %v1612_v8, %v1864_v39 }
 0x206   : > { %1623 = vtanh.f32 %v916_v3  ;;  %v926_v11 = vadd.f32 %v1444_v10, %v1853_v57  ;;  %v920_v12 = vpop.f32.mrb[25].mxu1  ;;  %1044 = vadd.xlane.f32.xlu0 %v990_v9 }
 0x207   : > { %v1614_v13 = vpop.eup %1613  ;;  %v921_v14 = vadd.f32 %v1853_v57, %v920_v12 }
 0x208   : > { %v1616_v16 = vpop.eup %1615  ;;  %1625 = vtanh.f32 %v926_v11  ;;  %v992_v17 = vmul.f32 %v1614_v13, %v1864_v39 }
 0x209   : > { %1627 = vtanh.f32 %v921_v14  ;;  %1046 = vadd.xlane.f32.xlu1 %v991_v15  ;;  %v993_v19 = vmul.f32 %v1616_v16, %v1864_v39 }
 0x20a   : > { %1048 = vadd.xlane.f32.xlu0 %v992_v17 }
 0x20b   : > { %v1618_v18 = vpop.eup %1617 }
 0x20c   : > { %v1620_v20 = vpop.eup %1619  ;;  %v994_v21 = vmul.f32 %v1618_v18, %v1864_v39 }
 0x20d   : > { %1050 = vadd.xlane.f32.xlu1 %v993_v19  ;;  %v995_v57 = vmul.f32 %v1620_v20, %v1864_v39 }
 0x20e   : > { %1052 = vadd.xlane.f32.xlu0 %v994_v21 }
 0x20f   : > { %v1622_v22 = vpop.eup %1621 }
 0x210   : > { %v1624_v23 = vpop.eup %1623  ;;  %v996_v24 = vmul.f32 %v1622_v22, %v1864_v39 }
 0x211   : > { %1054 = vadd.xlane.f32.xlu1 %v995_v57  ;;  %v997_v27 = vmul.f32 %v1624_v23, %v1864_v39 }
 0x212   : > { %v1626_v25 = vpop.eup %1625  ;;  %1056 = vadd.xlane.f32.xlu0 %v996_v24 }
 0x213   : > { %v1628_v26 = vpop.eup %1627  ;;  %v999_v28 = vmul.f32 %v1626_v25, %v1864_v39 }
 0x214   : > { %v998_v29 = vmul.f32 %v1628_v26, %v1864_v39 }
 0x215   : > { %1058 = vadd.xlane.f32.xlu1 %v997_v27 }
 0x216   : > { %1060 = vadd.xlane.f32.xlu0 %v998_v29 }
 0x219   : > { %1062 = vadd.xlane.f32.xlu1 %v999_v28 }
 0x266   : > { %v1003_v31 = vpop.xlane.xlu0 %1002 }
 0x267   : > { %v1067_v39 = vadd.f32 %v1924_v30, %v1003_v31 }
 0x269   : > { %1100 = vst.msk [vmem:[%s1931_s9 + $0x8] sm:$0xff] %vm1098_vm2, %v1067_v39 }
 0x26a   : > { %v1007_v32 = vpop.xlane.xlu1 %1006  ;;  %v1001_v33 = vpop.xlane.xlu0 %1000 }
 0x26b   : > { %v1069_v34 = vadd.f32 %v1924_v30, %v1007_v32  ;;  %v1066_v35 = vadd.f32 %v1924_v30, %v1001_v33 }
 0x26d   : > { %1102 = vst.msk [vmem:[%s1931_s9 + $0x18] sm:$0xff] %vm1098_vm2, %v1069_v34  ;;  %1099 = vst.msk [vmem:[%s1931_s9] sm:$0xff] %vm1098_vm2, %v1066_v35 }
 0x26e   : > { %v1005_v36 = vpop.xlane.xlu1 %1004 }
 0x26f   : > { %v1068_v37 = vadd.f32 %v1924_v30, %v1005_v36  ;;  %v1009_v38 = vpop.xlane.xlu0 %1008 }
 0x270   : > { %v1070_v40 = vadd.f32 %v1924_v30, %v1009_v38 }
 0x271   : > { %1101 = vst.msk [vmem:[%s1931_s9 + $0x10] sm:$0xff] %vm1098_vm2, %v1068_v37 }
 0x272   : > { %1103 = vst.msk [vmem:[%s1931_s9 + $0x20] sm:$0xff] %vm1098_vm2, %v1070_v40  ;;  %v1011_v41 = vpop.xlane.xlu1 %1010 }
 0x273   : > { %v1071_v42 = vadd.f32 %v1924_v30, %v1011_v41  ;;  %v1013_v43 = vpop.xlane.xlu0 %1012 }
 0x274   : > { %v1072_v44 = vadd.f32 %v1924_v30, %v1013_v43 }
 0x275   : > { %1104 = vst.msk [vmem:[%s1931_s9 + $0x28] sm:$0xff] %vm1098_vm2, %v1071_v42 }
 0x276   : > { %1105 = vst.msk [vmem:[%s1931_s9 + $0x30] sm:$0xff] %vm1098_vm2, %v1072_v44  ;;  %v1015_v45 = vpop.xlane.xlu1 %1014 }
 0x277   : > { %v1073_v46 = vadd.f32 %v1924_v30, %v1015_v45  ;;  %v1017_v47 = vpop.xlane.xlu0 %1016 }
 0x278   : > { %v1074_v48 = vadd.f32 %v1924_v30, %v1017_v47 }
 0x279   : > { %1106 = vst.msk [vmem:[%s1931_s9 + $0x38] sm:$0xff] %vm1098_vm2, %v1073_v46 }
 0x27a   : > { %1107 = vst.msk [vmem:[%s1931_s9 + $0x40] sm:$0xff] %vm1098_vm2, %v1074_v48  ;;  %v1019_v49 = vpop.xlane.xlu1 %1018 }
 0x27b   : > { %v1075_v50 = vadd.f32 %v1924_v30, %v1019_v49  ;;  %v1021_v51 = vpop.xlane.xlu0 %1020 }
 0x27c   : > { %v1076_v52 = vadd.f32 %v1924_v30, %v1021_v51 }
 0x27d   : > { %1108 = vst.msk [vmem:[%s1931_s9 + $0x48] sm:$0xff] %vm1098_vm2, %v1075_v50 }
 0x27e   : > { %1109 = vst.msk [vmem:[%s1931_s9 + $0x50] sm:$0xff] %vm1098_vm2, %v1076_v52  ;;  %v1023_v53 = vpop.xlane.xlu1 %1022 }
 0x27f   : > { %v1077_v54 = vadd.f32 %v1924_v30, %v1023_v53  ;;  %v1025_v55 = vpop.xlane.xlu0 %1024 }
 0x280   : > { %v1078_v56 = vadd.f32 %v1924_v30, %v1025_v55 }
 0x281   : > { %1110 = vst.msk [vmem:[%s1931_s9 + $0x58] sm:$0xff] %vm1098_vm2, %v1077_v54 }
 0x282   : > { %1111 = vst.msk [vmem:[%s1931_s9 + $0x60] sm:$0xff] %vm1098_vm2, %v1078_v56  ;;  %v1027_v58 = vpop.xlane.xlu1 %1026 }
 0x283   : > { %v1079_v59 = vadd.f32 %v1924_v30, %v1027_v58  ;;  %v1029_v60 = vpop.xlane.xlu0 %1028 }
 0x284   : > { %v1080_v61 = vadd.f32 %v1924_v30, %v1029_v60 }
 0x285   : > { %1112 = vst.msk [vmem:[%s1931_s9 + $0x68] sm:$0xff] %vm1098_vm2, %v1079_v59 }
 0x286   : > { %1113 = vst.msk [vmem:[%s1931_s9 + $0x70] sm:$0xff] %vm1098_vm2, %v1080_v61  ;;  %v1031_v62 = vpop.xlane.xlu1 %1030 }
 0x287   : > { %v1081_v63 = vadd.f32 %v1924_v30, %v1031_v62  ;;  %v1033_v0 = vpop.xlane.xlu0 %1032 }
 0x288   : > { %v1082_v1 = vadd.f32 %v1924_v30, %v1033_v0 }
 0x289   : > { %1114 = vst.msk [vmem:[%s1931_s9 + $0x78] sm:$0xff] %vm1098_vm2, %v1081_v63 }
 0x28a   : > { %1115 = vst.msk [vmem:[%s1931_s9 + $0x80] sm:$0xff] %vm1098_vm2, %v1082_v1  ;;  %v1035_v2 = vpop.xlane.xlu1 %1034 }
 0x28b   : > { %v1083_v3 = vadd.f32 %v1924_v30, %v1035_v2  ;;  %v1037_v4 = vpop.xlane.xlu0 %1036 }
 0x28c   : > { %v1084_v5 = vadd.f32 %v1924_v30, %v1037_v4 }
 0x28d   : > { %1116 = vst.msk [vmem:[%s1931_s9 + $0x88] sm:$0xff] %vm1098_vm2, %v1083_v3 }
 0x28e   : > { %1117 = vst.msk [vmem:[%s1931_s9 + $0x90] sm:$0xff] %vm1098_vm2, %v1084_v5  ;;  %v1039_v6 = vpop.xlane.xlu1 %1038 }
 0x28f   : > { %v1085_v7 = vadd.f32 %v1924_v30, %v1039_v6  ;;  %v1041_v8 = vpop.xlane.xlu0 %1040 }
 0x290   : > { %v1086_v9 = vadd.f32 %v1924_v30, %v1041_v8 }
 0x291   : > { %1118 = vst.msk [vmem:[%s1931_s9 + $0x98] sm:$0xff] %vm1098_vm2, %v1085_v7 }
 0x292   : > { %1119 = vst.msk [vmem:[%s1931_s9 + $0xa0] sm:$0xff] %vm1098_vm2, %v1086_v9  ;;  %v1043_v10 = vpop.xlane.xlu1 %1042 }
 0x293   : > { %v1087_v11 = vadd.f32 %v1924_v30, %v1043_v10  ;;  %v1045_v12 = vpop.xlane.xlu0 %1044 }
 0x294   : > { %v1088_v13 = vadd.f32 %v1924_v30, %v1045_v12 }
 0x295   : > { %1120 = vst.msk [vmem:[%s1931_s9 + $0xa8] sm:$0xff] %vm1098_vm2, %v1087_v11 }
 0x296   : > { %1121 = vst.msk [vmem:[%s1931_s9 + $0xb0] sm:$0xff] %vm1098_vm2, %v1088_v13  ;;  %v1047_v14 = vpop.xlane.xlu1 %1046 }
 0x297   : > { %v1089_v15 = vadd.f32 %v1924_v30, %v1047_v14  ;;  %v1049_v16 = vpop.xlane.xlu0 %1048 }
 0x298   : > { %v1090_v17 = vadd.f32 %v1924_v30, %v1049_v16 }
 0x299   : > { %1122 = vst.msk [vmem:[%s1931_s9 + $0xb8] sm:$0xff] %vm1098_vm2, %v1089_v15 }
 0x29a   : > { %1123 = vst.msk [vmem:[%s1931_s9 + $0xc0] sm:$0xff] %vm1098_vm2, %v1090_v17  ;;  %v1051_v18 = vpop.xlane.xlu1 %1050 }
 0x29b   : > { %v1091_v19 = vadd.f32 %v1924_v30, %v1051_v18  ;;  %v1053_v20 = vpop.xlane.xlu0 %1052 }
 0x29c   : > { %v1092_v21 = vadd.f32 %v1924_v30, %v1053_v20 }
 0x29d   : > { %1124 = vst.msk [vmem:[%s1931_s9 + $0xc8] sm:$0xff] %vm1098_vm2, %v1091_v19 }
 0x29e   : > { %1125 = vst.msk [vmem:[%s1931_s9 + $0xd0] sm:$0xff] %vm1098_vm2, %v1092_v21  ;;  %v1055_v22 = vpop.xlane.xlu1 %1054 }
 0x29f   : > { %v1093_v57 = vadd.f32 %v1924_v30, %v1055_v22  ;;  %v1057_v23 = vpop.xlane.xlu0 %1056 }
 0x2a0   : > { %v1094_v24 = vadd.f32 %v1924_v30, %v1057_v23 }
 0x2a1   : > { %1126 = vst.msk [vmem:[%s1931_s9 + $0xd8] sm:$0xff] %vm1098_vm2, %v1093_v57 }
 0x2a2   : > { %1127 = vst.msk [vmem:[%s1931_s9 + $0xe0] sm:$0xff] %vm1098_vm2, %v1094_v24  ;;  %v1059_v25 = vpop.xlane.xlu1 %1058 }
 0x2a3   : > { %v1095_v26 = vadd.f32 %v1924_v30, %v1059_v25  ;;  %v1061_v27 = vpop.xlane.xlu0 %1060 }
 0x2a4   : > { %v1096_v28 = vadd.f32 %v1924_v30, %v1061_v27 }
 0x2a5   : > { %1128 = vst.msk [vmem:[%s1931_s9 + $0xe8] sm:$0xff] %vm1098_vm2, %v1095_v26 }
 0x2a6   : > { %1129 = vst.msk [vmem:[%s1931_s9 + $0xf0] sm:$0xff] %vm1098_vm2, %v1096_v28  ;;  %v1063_v29 = vpop.xlane.xlu1 %1062 }
 0x2a7   : > { %v1097_v31 = vadd.f32 %v1924_v30, %v1063_v29 }
 0x2a9   : > { %1130 = vst.msk [vmem:[%s1931_s9 + $0xf8] sm:$0xff] %vm1098_vm2, %v1097_v31 }
 0x2aa PF: > { %s18_s26 = sadd.s32 1, %s1635_s26  }
 0x2ab   : > { %p15_p4 = scmp.ge.s32.totalorder %s18_s26, 4  }
 0x2ad   :  { %17 = sbr.rel (!%p15_p4) target bundleno = 2 (0x2), region = 78 }

</bundles_post_ra>
